<compile_context>
chip_gen: v7x
topology: tpu7x:2x2x1
jax: 0.10.0
libtpu: 0.0.40
codegen_flags: <defaults>
</compile_context>

<pallas_src>
import functools

import jax
import jax.numpy as jnp
from jax.experimental import pallas as pl
from jax.experimental.pallas import tpu as pltpu


def _round_up(x, m):
    return ((x + m - 1) // m) * m


def _vmem_budget():
    """(input-buffer budget bytes, vmem_limit_bytes), generation aware."""
    cap = 64 * 1024 * 1024
    try:
        info = pltpu.get_tpu_info()
        cap = int(getattr(info, "vmem_capacity_bytes", cap) or cap)
    except Exception:
        pass
    if cap >= 96 * 1024 * 1024:          # v5e / v6e: 128 MiB physical VMEM
        limit = 64 * 1024 * 1024
    else:                                # v7x: 64 MiB physical VMEM
        limit = 32 * 1024 * 1024
    return limit // 2, limit


def _fit_tile(budget_bytes, per_unit_bytes, n, granularity):
    """Largest batch tile (multiple of `granularity`) fitting 2 buffers in budget."""
    t = budget_bytes // (2 * per_unit_bytes)
    t = max(granularity, (t // granularity) * granularity)
    if t >= n:
        return n, 1                      # one block covers the whole batch
    steps = -(-n // t)
    return t, steps


def _focal_loss_kernel(x_ref, t_ref, a_ref, o_ref, acc_ref, *,
                       gamma, n_valid, tile, steps_per_core, class_axis):
    i = pl.program_id(1)

    @pl.when(i == 0)
    def _init():
        acc_ref[...] = jnp.zeros_like(acc_ref)

    x = x_ref[...].astype(jnp.float32)   # upcast after the DMA (bf16 streams as bf16)
    t = t_ref[...]                       # int32 target ids (size-1 class axis)
    a = a_ref[...].astype(jnp.float32)   # alpha[target], gathered in the wrapper

    batch_axis = 1 - class_axis

    # log-softmax gather via logsumexp: no full-width divide, no log(0).
    m = jnp.max(x, axis=class_axis, keepdims=True)
    se = jnp.sum(jnp.exp(x - m), axis=class_axis, keepdims=True)
    class_ids = jax.lax.broadcasted_iota(jnp.int32, x.shape, class_axis)
    x_t = jnp.sum(jnp.where(class_ids == t, x, 0.0),
                  axis=class_axis, keepdims=True)        # target logit
    log_p = x_t - m - jnp.log(se)
    probs = jnp.exp(log_p)

    q = 1.0 - probs
    g = float(gamma)
    if g == int(g) and g >= 1.0:
        qg = q                           # gamma=2 -> a single extra multiply
        for _ in range(int(g) - 1):
            qg = qg * q
    elif g == 0.0:
        qg = jnp.ones_like(q)
    else:
        qg = jnp.power(jnp.maximum(q, 0.0), g)

    loss = -a * qg * log_p               # (T, 1) or (1, T)

    # Mask samples past the true batch size (also discards any NaN/Inf coming
    # from unspecified data in partial boundary blocks).
    offset = (pl.program_id(0) * steps_per_core + i) * tile
    sample_ids = jax.lax.broadcasted_iota(jnp.int32, loss.shape, batch_axis) + offset
    acc_ref[...] += jnp.where(sample_ids < n_valid, loss, 0.0)

    @pl.when(i == pl.num_programs(1) - 1)
    def _finalize():
        part = jnp.sum(acc_ref[...])
        # Lane-dense output row for this parallel slice.
        o_ref[...] = jnp.full(o_ref.shape, part, dtype=o_ref.dtype)


def focal_loss(inputs, targets, alpha_vec=None, gamma=2.0, size_average=True):
    """inputs: (N, C) float logits, targets: (N,) int, alpha_vec: (C,) float or None."""
    n, c = inputs.shape
    if alpha_vec is None:
        alpha_vec = jnp.ones((c,), dtype=jnp.float32)

    t_i = targets.astype(jnp.int32)
    a_i = alpha_vec.astype(jnp.float32)[t_i]          # per-row alpha gather (O(N), wrapper)

    budget, vmem_limit = _vmem_budget()
    small_c = c <= 32

    if small_c:
        # Samples on the 128-lane axis, classes on sublanes -> no class padding.
        x = jnp.transpose(inputs)                     # (C, N); cheap for tiny C
        class_axis = 0
        per_unit = (_round_up(c, 8) + 16) * 4         # VMEM bytes per sample per buffer
        tile, steps = _fit_tile(budget, per_unit, n, 128)
        t2 = t_i.reshape(1, n)
        a2 = a_i.reshape(1, n)
        blk_x, blk_s, acc_shape = (c, tile), (1, tile), (1, tile)
    else:
        # Classes on lanes; class axis kept whole (full-array-dim block).
        x = inputs
        class_axis = 1
        per_unit = (_round_up(c, 128) + 256) * 4      # VMEM bytes per row per buffer
        tile, steps = _fit_tile(budget, per_unit, n, 8)
        t2 = t_i.reshape(n, 1)
        a2 = a_i.reshape(n, 1)
        blk_x, blk_s, acc_shape = (tile, c), (tile, 1), (tile, 1)

    num_par = 2 if steps >= 2 else 1                  # 2-TC split on v7x; serial elsewhere
    spc = -(-steps // num_par)                        # grid steps per parallel slice
    grid = (num_par, spc)

    if small_c:
        def bmap(p, i, spc=spc):
            return (0, p * spc + i)
    else:
        def bmap(p, i, spc=spc):
            return (p * spc + i, 0)

    kernel = functools.partial(
        _focal_loss_kernel, gamma=float(gamma), n_valid=n, tile=tile,
        steps_per_core=spc, class_axis=class_axis)

    out = pl.pallas_call(
        kernel,
        out_shape=jax.ShapeDtypeStruct((num_par * 8, 128), jnp.float32),
        grid_spec=pltpu.PrefetchScalarGridSpec(
            num_scalar_prefetch=0,
            grid=grid,
            in_specs=[
                pl.BlockSpec(blk_x, bmap),
                pl.BlockSpec(blk_s, bmap),
                pl.BlockSpec(blk_s, bmap),
            ],
            out_specs=pl.BlockSpec((8, 128), lambda p, i: (p, 0)),
            scratch_shapes=[pltpu.VMEM(acc_shape, jnp.float32)],
        ),
        compiler_params=pltpu.CompilerParams(
            dimension_semantics=("parallel", "arbitrary"),
            vmem_limit_bytes=vmem_limit,
        ),
    )(x, t2, a2)

    partials = out[::8, 0]                            # one partial per parallel slice
    total = jnp.sum(partials)
    denom = float(n) if size_average else 1.0
    return total / denom


def focal_loss_ref(inputs, targets, alpha_vec, gamma=2.0):
    """Plain-JAX reference of the PyTorch forward (sanity check)."""
    p = jax.nn.softmax(inputs.astype(jnp.float32), axis=1)
    probs = jnp.take_along_axis(p, targets[:, None], axis=1)
    alpha_i = alpha_vec[targets][:, None]
    batch_loss = -alpha_i * (1.0 - probs) ** gamma * jnp.log(probs)
    return jnp.mean(batch_loss)


if __name__ == "__main__":
    key = jax.random.PRNGKey(0)
    kx, kt, kx2, kt2 = jax.random.split(key, 4)

    # class_num=2, alpha=None (-> ones), gamma=2: module defaults.
    N, C = 8, 2
    inputs = jax.random.normal(kx, (N, C), dtype=jnp.float32)
    targets = jax.random.randint(kt, (N,), 0, C, dtype=jnp.int32)
    alpha_vec = jnp.ones((C,), dtype=jnp.float32)

    loss = jax.block_until_ready(focal_loss(inputs, targets, alpha_vec, gamma=2.0))
    ref = focal_loss_ref(inputs, targets, alpha_vec, gamma=2.0)
    assert jnp.allclose(loss, ref, rtol=1e-5, atol=1e-6), (loss, ref)

    # Also exercise the wide-class (classes-on-lanes) path.
    N2, C2 = 16, 40
    inputs2 = jax.random.normal(kx2, (N2, C2), dtype=jnp.float32)
    targets2 = jax.random.randint(kt2, (N2,), 0, C2, dtype=jnp.int32)
    alpha2 = jnp.ones((C2,), dtype=jnp.float32)
    loss2 = jax.block_until_ready(focal_loss(inputs2, targets2, alpha2, gamma=2.0))
    ref2 = focal_loss_ref(inputs2, targets2, alpha2, gamma=2.0)
    assert jnp.allclose(loss2, ref2, rtol=1e-5, atol=1e-6), (loss2, ref2)

    print("KERNEL_OK")
</pallas_src>

<mosaic_0001>
module attributes {stable_mosaic.version = 11 : i64} {
  func.func @_focal_loss_kernel(%arg0: i32, %arg1: i32, %arg2: memref<2x8xf32, #tpu.memory_space<vmem>>, %arg3: memref<1x8xi32, #tpu.memory_space<vmem>>, %arg4: memref<1x8xf32, #tpu.memory_space<vmem>>, %arg5: memref<8x128xf32, #tpu.memory_space<vmem>>, %arg6: memref<1x8xf32, #tpu.memory_space<vmem>>) attributes {dimension_semantics = [#tpu.dimension_semantics<parallel>, #tpu.dimension_semantics<arbitrary>], iteration_bounds = array<i64: 1, 1>, scalar_prefetch = 0 : i64, scratch_operands = 1 : i64, tpu.core_type = #tpu.core_type<tc>, window_params = [{transform_indices = @transform_0, window_bounds = array<i64: 2, 8>}, {transform_indices = @transform_1, window_bounds = array<i64: 1, 8>}, {transform_indices = @transform_2, window_bounds = array<i64: 1, 8>}, {transform_indices = @transform_3, window_bounds = array<i64: 8, 128>}]} {
    %c0_i32 = arith.constant 0 : i32
    %0 = arith.cmpi eq, %arg1, %c0_i32 : i32
    %1 = arith.extui %0 : i1 to i32
    %c0_i32_0 = arith.constant 0 : i32
    %2 = arith.cmpi ne, %1, %c0_i32_0 : i32
    scf.if %2 {
      %cst_19 = arith.constant 0.000000e+00 : f32
      %47 = vector.broadcast %cst_19 : f32 to vector<1x8xf32>
      %c0_20 = arith.constant 0 : index
      %c0_21 = arith.constant 0 : index
      %48 = vector.load %arg6[%c0_20, %c0_21] : memref<1x8xf32, #tpu.memory_space<vmem>>, vector<1x8xf32>
      tpu.vector_store %arg6[%c0_20, %c0_21], %47 {strides = array<i32>} : memref<1x8xf32, #tpu.memory_space<vmem>>, vector<1x8xf32>,
    } else {
    }
    %c0 = arith.constant 0 : index
    %c0_1 = arith.constant 0 : index
    %3 = vector.load %arg2[%c0, %c0_1] : memref<2x8xf32, #tpu.memory_space<vmem>>, vector<2x8xf32>
    %c0_2 = arith.constant 0 : index
    %c0_3 = arith.constant 0 : index
    %4 = vector.load %arg3[%c0_2, %c0_3] : memref<1x8xi32, #tpu.memory_space<vmem>>, vector<1x8xi32>
    %c0_4 = arith.constant 0 : index
    %c0_5 = arith.constant 0 : index
    %5 = vector.load %arg4[%c0_4, %c0_5] : memref<1x8xf32, #tpu.memory_space<vmem>>, vector<1x8xf32>
    %cst = arith.constant dense<0xFF800000> : vector<8xf32>
    %6 = vector.multi_reduction <maximumf>, %3, %cst [0] : vector<2x8xf32> to vector<8xf32>
    %7 = vector.shape_cast %6 : vector<8xf32> to vector<1x8xf32>
    %8 = vector.broadcast %7 : vector<1x8xf32> to vector<2x8xf32>
    %9 = arith.subf %3, %8 : vector<2x8xf32>
    %10 = math.exp %9 : vector<2x8xf32>
    %cst_6 = arith.constant dense<0.000000e+00> : vector<8xf32>
    %11 = vector.multi_reduction <add>, %10, %cst_6 [0] : vector<2x8xf32> to vector<8xf32>
    %12 = vector.shape_cast %11 : vector<8xf32> to vector<1x8xf32>
    %13 = tpu.iota {dimensions = array<i32: 0>} : vector<2x8xi32>
    %14 = vector.broadcast %4 : vector<1x8xi32> to vector<2x8xi32>
    %15 = arith.cmpi eq, %13, %14 : vector<2x8xi32>
    %cst_7 = arith.constant 0.000000e+00 : f32
    %16 = vector.broadcast %cst_7 : f32 to vector<2x8xf32>
    %17 = arith.select %15, %3, %16 : vector<2x8xi1>, vector<2x8xf32>
    %cst_8 = arith.constant dense<0.000000e+00> : vector<8xf32>
    %18 = vector.multi_reduction <add>, %17, %cst_8 [0] : vector<2x8xf32> to vector<8xf32>
    %19 = vector.shape_cast %18 : vector<8xf32> to vector<1x8xf32>
    %20 = arith.subf %19, %7 : vector<1x8xf32>
    %21 = math.log %12 : vector<1x8xf32>
    %22 = arith.subf %20, %21 : vector<1x8xf32>
    %23 = math.exp %22 : vector<1x8xf32>
    %cst_9 = arith.constant 1.000000e+00 : f32
    %24 = vector.broadcast %cst_9 : f32 to vector<1x8xf32>
    %25 = arith.subf %24, %23 : vector<1x8xf32>
    %26 = arith.mulf %25, %25 : vector<1x8xf32>
    %cst_10 = arith.constant 0.000000e+00 : f32
    %27 = vector.broadcast %cst_10 : f32 to vector<1x8xf32>
    %28 = arith.subf %27, %5 : vector<1x8xf32>
    %29 = arith.mulf %28, %26 : vector<1x8xf32>
    %30 = arith.mulf %29, %22 : vector<1x8xf32>
    %c1_i32 = arith.constant 1 : i32
    %31 = arith.muli %arg0, %c1_i32 : i32
    %32 = arith.addi %31, %arg1 : i32
    %c8_i32 = arith.constant 8 : i32
    %33 = arith.muli %32, %c8_i32 : i32
    %34 = tpu.iota {dimensions = array<i32: 1>} : vector<1x8xi32>
    %35 = vector.broadcast %33 : i32 to vector<1x8xi32>
    %36 = arith.addi %34, %35 : vector<1x8xi32>
    %c0_11 = arith.constant 0 : index
    %c0_12 = arith.constant 0 : index
    %37 = vector.load %arg6[%c0_11, %c0_12] : memref<1x8xf32, #tpu.memory_space<vmem>>, vector<1x8xf32>
    %c8_i32_13 = arith.constant 8 : i32
    %38 = vector.broadcast %c8_i32_13 : i32 to vector<1x8xi32>
    %39 = arith.cmpi slt, %36, %38 : vector<1x8xi32>
    %cst_14 = arith.constant 0.000000e+00 : f32
    %40 = vector.broadcast %cst_14 : f32 to vector<1x8xf32>
    %41 = arith.select %39, %30, %40 : vector<1x8xi1>, vector<1x8xf32>
    %42 = arith.addf %37, %41 : vector<1x8xf32>
    %c0_15 = arith.constant 0 : index
    %c0_16 = arith.constant 0 : index
    %43 = vector.load %arg6[%c0_15, %c0_16] : memref<1x8xf32, #tpu.memory_space<vmem>>, vector<1x8xf32>
    tpu.vector_store %arg6[%c0_15, %c0_16], %42 {strides = array<i32>} : memref<1x8xf32, #tpu.memory_space<vmem>>, vector<1x8xf32>,
    %c0_i32_17 = arith.constant 0 : i32
    %44 = arith.cmpi eq, %arg1, %c0_i32_17 : i32
    %45 = arith.extui %44 : i1 to i32
    %c0_i32_18 = arith.constant 0 : i32
    %46 = arith.cmpi ne, %45, %c0_i32_18 : i32
    scf.if %46 {
      %c0_19 = arith.constant 0 : index
      %c0_20 = arith.constant 0 : index
      %47 = vector.load %arg6[%c0_19, %c0_20] : memref<1x8xf32, #tpu.memory_space<vmem>>, vector<1x8xf32>
      %48 = vector.shape_cast %47 : vector<1x8xf32> to vector<1x1x8xf32>
      %cst_21 = arith.constant dense<0.000000e+00> : vector<1xf32>
      %49 = vector.multi_reduction <add>, %48, %cst_21 [1, 2] : vector<1x1x8xf32> to vector<1xf32>
      %50 = vector.shape_cast %49 : vector<1xf32> to vector<1x1x1xf32>
      %51 = vector.extract %50[0, 0, 0] : f32 from vector<1x1x1xf32>
      %52 = vector.broadcast %51 : f32 to vector<8x128xf32>
      %c0_22 = arith.constant 0 : index
      %c0_23 = arith.constant 0 : index
      %53 = vector.load %arg5[%c0_22, %c0_23] : memref<8x128xf32, #tpu.memory_space<vmem>>, vector<8x128xf32>
      tpu.vector_store %arg5[%c0_22, %c0_23], %52 {strides = array<i32>} : memref<8x128xf32, #tpu.memory_space<vmem>>, vector<8x128xf32>,
    } else {
    }
    return
  }
  func.func @transform_0(%arg0: i32, %arg1: i32) -> (i32, i32) {
    %c1_i32 = arith.constant 1 : i32
    %0 = arith.muli %arg0, %c1_i32 : i32
    %1 = arith.addi %0, %arg1 : i32
    %c0_i32 = arith.constant 0 : i32
    %c0_i32_0 = arith.constant 0 : i32
    return %c0_i32, %1 : i32, i32
  }
  func.func @transform_1(%arg0: i32, %arg1: i32) -> (i32, i32) {
    %c1_i32 = arith.constant 1 : i32
    %0 = arith.muli %arg0, %c1_i32 : i32
    %1 = arith.addi %0, %arg1 : i32
    %c0_i32 = arith.constant 0 : i32
    %c0_i32_0 = arith.constant 0 : i32
    return %c0_i32, %1 : i32, i32
  }
  func.func @transform_2(%arg0: i32, %arg1: i32) -> (i32, i32) {
    %c1_i32 = arith.constant 1 : i32
    %0 = arith.muli %arg0, %c1_i32 : i32
    %1 = arith.addi %0, %arg1 : i32
    %c0_i32 = arith.constant 0 : i32
    %c0_i32_0 = arith.constant 0 : i32
    return %c0_i32, %1 : i32, i32
  }
  func.func @transform_3(%arg0: i32, %arg1: i32) -> (i32, i32) {
    %c0_i32 = arith.constant 0 : i32
    %c0_i32_0 = arith.constant 0 : i32
    return %arg0, %c0_i32 : i32, i32
  }
}

</mosaic_0001>

<bundles_post_ra>
// kernel: tpu_custom_call.1
= control target key start
LH: loop header
LB: loop body
LE: loop exit
PB: predicated region body
PF: predicated region fallthrough
CT: control target
= control target key end

     0   :  { %8 = vsyncpa [#allocation4], 0  ;;  %s280_s0 = inlined_call_operand.hbm [shape: f32[2,8], index: 0, kind: input, shape index: {}]   ;;  %s281_s1 = inlined_call_operand.vmem [shape: s32[1,8], index: 1, kind: input, shape index: {}]   ;;  %s282_s2 = inlined_call_operand.vmem [shape: f32[1,8], index: 2, kind: input, shape index: {}]   ;;  %s283_s3 = inlined_call_operand.hbm [shape: f32[8,128], index: 3, kind: output, shape index: {}]  }
   0x1   :  { %9 = vsyncpa [#allocation5], 0  ;;  %s221_s12 = smov [#allocation3]   ;;  %s173_s16 = scalar_lea.hbm %s280_s0, 32 }
   0x2   :  { %s19_s13 = sshll.u32 %s221_s12, 4  ;;  %p174_p0 = scmp.ne.s32.totalorder %s280_s0, %s173_s16  ;;  %s20_s13 = int_to_ptr.vmem [resolvable:$true] %s19_s13 }
   0x3   :  { %p177_p1 = scmp.lt.u32.totalorder %s173_s16, %s280_s0 }
   0x5   :  { %p179_p2 = pnand %p177_p1, %p174_p0 }
   0x7   :  { %182 = shalt.err (!%p179_p2)
}
   0x8   :  { %s183_s21 = scalar_lea.vmem %s20_s13, 32  ;;  %p188_p4 = scmp.lt.s32.totalorder %s20_s13, %s20_s13 }
   0x9   :  { %p184_p3 = scmp.ne.s32.totalorder %s20_s13, %s183_s21  ;;  %p189_p5 = scmp.lt.s32.totalorder %s183_s21, %s183_s21 }
   0xb   :  { %p190_p6 = por %p189_p5, %p188_p4 }
   0xd   :  { %p191_p7 = pnand %p190_p6, %p184_p3 }
   0xf   :  { %194 = shalt.err (!%p191_p7)
}
  0x10   :  { %22 = dma.hbm_to_vmem [thread:$0]  %s280_s0, 32, %s20_s13, [#allocation4]  }
  0x11   :  { %217 = dma.done.wait [#allocation4], 32  }
  0x12   :  { %218 = vsyncadd [#allocation4], 4294967264  ;;  %vm63_vm0 = vcmask 57344   ;;  %v222_v0 = vmov 0.0   ;;  %vm68_vm1 = vcmask 58368   ;;  %v86_v8 = vlaneseq }
  0x13   :  { %64 = vst.msk [vmem:[#allocation2] sm:$0x1] %vm63_vm0, %v222_v0  ;;  %v65_v1 = vld [vmem:[#allocation3] sm:$0x3]  ;;  %v161_v12 = vld [vmem:[%s281_s1] ss:$0 sm:$0xff] }
  0x14   :  { %v69_v2 = vsel %vm68_vm1, %v65_v1, -inf  ;;  %v87_v11 = vshrl.u32 %v86_v8, 7  ;;  %v67_v35 = vld [vmem:[%s282_s2] sm:$0x1]  ;;  %v115_v39 = vand.u32 127, %v86_v8  ;;  %s223_s2 = smov [#allocation6]  }
  0x15   :  { %v70_v3 = vrot.slane %v69_v2, 4  ;;  %v109_v38 = vsub.f32 0.0, %v67_v35  ;;  %s146_s26 = sshll.u32 %s223_s2, 4  ;;  %s147_s26 = int_to_ptr.vmem [resolvable:$true] %s146_s26 }
  0x16   :  { %vm92_vm2 = vcmp.eq.s32.totalorder %v87_v11, %v161_v12  ;;  %vm119_vm3 = vcmp.lt.s32.totalorder %v115_v39, 8  ;;  %s195_s28 = scalar_lea.vmem %s147_s26, 128  ;;  %p200_p9 = scmp.lt.s32.totalorder %s147_s26, %s147_s26 }
  0x17   :  { %v71_v4 = vmax.f32 %v69_v2, %v70_v3  ;;  %v93_v14 = vsel %vm92_vm2, %v65_v1, 0.0  ;;  %p196_p8 = scmp.ne.s32.totalorder %s147_s26, %s195_s28  ;;  %p201_p10 = scmp.lt.s32.totalorder %s195_s28, %s195_s28 }
  0x18   :  { %v94_v15 = vsel %vm68_vm1, %v93_v14, 0.0 }
  0x19   :  { %v72_v5 = vrot.slane %v71_v4, 2  ;;  %v95_v16 = vrot.slane %v94_v15, 4  ;;  %p202_p11 = por %p201_p10, %p200_p9 }
  0x1a   :  { %v118_v43 = vld [vmem:[#allocation2] sm:$0x1] }
  0x1b   :  { %v73_v6 = vmax.f32 %v71_v4, %v72_v5  ;;  %v96_v20 = vadd.f32 %v95_v16, %v94_v15  ;;  %p203_p12 = pnand %p202_p11, %p196_p8 }
  0x1d   :  { %v74_v7 = vrot.slane %v73_v6, 1  ;;  %v97_v23 = vrot.slane %v96_v20, 2 }
  0x1f   :  { %v75_v9 = vmax.f32 %v73_v6, %v74_v7  ;;  %v98_v26 = vadd.f32 %v97_v23, %v96_v20 }
  0x21   :  { %v76_v10 = vsub.f32 %v65_v1, %v75_v9  ;;  %v99_v28 = vrot.slane %v98_v26, 1 }
  0x23   :  { %v77_v13 = vmul.f32 1.442695, %v76_v10  ;;  %v100_v29 = vadd.f32 %v99_v28, %v98_v26 }
  0x25   :  { %167 = vpow2.f32 %v77_v13  ;;  %v101_v30 = vsub.f32 %v100_v29, %v75_v9 }
  0x2f   :  { %v168_v17 = vpop.eup %167 }
  0x30   :  { %v79_v18 = vsel %vm68_vm1, %v168_v17, 0.0 }
  0x31   :  { %v80_v19 = vrot.slane %v79_v18, 4 }
  0x33   :  { %v81_v21 = vadd.f32 %v80_v19, %v79_v18 }
  0x35   :  { %v82_v22 = vrot.slane %v81_v21, 2 }
  0x37   :  { %v83_v24 = vadd.f32 %v82_v22, %v81_v21 }
  0x39   :  { %v84_v25 = vrot.slane %v83_v24, 1 }
  0x3b   :  { %v85_v27 = vadd.f32 %v84_v25, %v83_v24 }
  0x3d   :  { %169 = vlog2.f32 %v85_v27 }
  0x47   :  { %v170_v31 = vpop.eup %169 }
  0x48   :  { %v103_v32 = vmul.f32 0.6931472, %v170_v31 }
  0x4a   :  { %v104_v33 = vsub.f32 %v101_v30, %v103_v32 }
  0x4c   :  { %v105_v34 = vmul.f32 1.442695, %v104_v33 }
  0x4e   :  { %171 = vpow2.f32 %v105_v34 }
  0x58   :  { %v172_v36 = vpop.eup %171 }
  0x59   :  { %v107_v37 = vsub.f32 1.0, %v172_v36 }
  0x5b   :  { %v108_v40 = vmul.f32 %v107_v37, %v107_v37 }
  0x5d   :  { %v110_v41 = vmul.f32 %v109_v38, %v108_v40 }
  0x5f   :  { %v111_v42 = vmul.f32 %v110_v41, %v104_v33 }
  0x61   :  { %v120_v44 = vsel %vm119_vm3, %v111_v42, 0.0 }
  0x62   :  { %v121_v45 = vadd.f32 %v120_v44, %v118_v43 }
  0x64   :  { %123 = vst.msk [vmem:[#allocation2] sm:$0x1] %vm63_vm0, %v121_v45 }
  0x6b   :  { %v127_v46 = vld [vmem:[#allocation2] sm:$0x1] }
  0x6c   :  { %v128_v47 = vsel %vm63_vm0, %v127_v46, 0.0 }
  0x6d   :  { %129 = vadd.xlane.f32.xlu0 %v128_v47 }
  0xfa   :  { %v130_v48 = vpop.xlane.xlu0 %129 }
  0xfb   :  { %v131_v49 = vrot.slane %v130_v48, 4 }
  0xfd   :  { %v132_v50 = vadd.f32 %v131_v49, %v130_v48 }
  0xff   :  { %v133_v51 = vrot.slane %v132_v50, 2 }
 0x101   :  { %v134_v52 = vadd.f32 %v133_v51, %v132_v50 }
 0x103   :  { %v135_v53 = vrot.slane %v134_v52, 1 }
 0x105   :  { %v136_v54 = vadd.f32 %v135_v53, %v134_v52 }
 0x107   :  { %162 = vpush %v136_v54 }
 0x138   :  { %s163_s27 = spop %162 }
 0x139   :  { %v138_v55 = vstv %s163_s27 }
 0x13a   :  { %139 = vst [vmem:[#allocation6] sm:$0xff] %v138_v55 }
 0x13b   :  { %206 = shalt.err (!%p203_p12)
}
 0x13c   :  { %s207_s4 = scalar_lea.hbm %s283_s3, 128 }
 0x13d   :  { %p208_p13 = scmp.ne.s32.totalorder %s283_s3, %s207_s4  ;;  %p211_p0 = scmp.lt.u32.totalorder %s207_s4, %s283_s3 }
 0x13f   :  { %p213_p1 = pnand %p211_p0, %p208_p13 }
 0x141   :  { %216 = shalt.err (!%p213_p1)
}
 0x142   :  { %149 = dma.vmem_to_hbm [thread:$0]  %s147_s26, 128, %s283_s3, [#allocation5]  }
 0x143   :  { %219 = dma.done.wait [#allocation5], 128  }
 0x144   :  { %220 = vsyncadd [#allocation5], 4294967168 }
 0x145   :  { %153 = vsyncpa [#allocation4], 1 }
 0x146   :  { %154 = vsyncpa [#allocation5], 1 }

</bundles_post_ra>
